<compile_context>
chip_gen: v7x
topology: tpu7x:2x2x1
jax: 0.10.0
libtpu: 0.0.40
codegen_flags: <defaults>
</compile_context>

<pallas_src>
import jax
import jax.numpy as jnp
from jax import lax
from jax.experimental import pallas as pl
from jax.experimental.pallas import tpu as pltpu

# ---------------------------------------------------------------------------
# Model hyper-parameters (mirrors RNN_model.__init__ choices)
# ---------------------------------------------------------------------------
INPUT_SIZE = 4          # input_size
OUTPUT_SIZE = 4         # output_size
N_HIDDEN = 32           # n_hidden
N_HIDDEN_DENSE = 32     # n_hidden_dense
N_LAYERS = 1            # n_layers
BATCH = 2
SEQ = 8
BN_EPS = 1e-5


def _pad8(n):
    return ((n + 7) // 8) * 8


def _slab_rows(I2, O, H):
    """Row offsets of the packed f32 weight mega-slab (width = H lanes)."""
    r_att1 = 0                 # w_att1^T          : (I2, H)
    r_ih = r_att1 + I2         # w_ih^T            : (I2, H)
    r_hh = r_ih + I2           # w_hh^T            : (H,  H)
    r_fc = r_hh + H            # w_fc^T            : (H,  H)
    r_att2 = r_fc + H          # w_att2 (out,in)   : (I2, H)  contract on dim 1
    r_heads = r_att2 + I2      # [w_mu; w_var]     : (2O, H)  contract on dim 1
    r_bias = r_heads + 2 * O   # 7 bias rows: b_att1, bn_g, bn_b, b_ih+b_hh,
    #                            b_fc, b_att2 (lane-padded), b_heads (lane-padded)
    total = _pad8(r_bias + 7)
    return r_att1, r_ih, r_hh, r_fc, r_att2, r_heads, r_bias, total


def _dot_t(a, b):
    """a (M, K) x b (N, K) -> (M, N), contracting on the last dim of both."""
    return lax.dot_general(a, b, (((1,), (1,)), ((), ())),
                           preferred_element_type=jnp.float32)


# ---------------------------------------------------------------------------
# Pallas kernel factory: whole forward pass for one problem instance
# ---------------------------------------------------------------------------
def _make_kernel(B, T, I2, O, H):
    TB = T * B
    twoO = 2 * O
    ROWS = _pad8(TB + B)                         # hid / output row count (24)
    (r_att1, r_ih, r_hh, r_fc, r_att2, r_heads, r_b, _) = _slab_rows(I2, O, H)

    def kernel(xs_ref, w_ref, out_ref, hid_ref):
        # xs_ref : (XROWS, H) per-instance slab:
        #            rows 0:T*B        time-major rnn_in, lanes 0:I2 (rest 0)
        #            rows T*B:T*B+B    h0_mu
        #            rows T*B+B:+2B    h0_var
        # w_ref  : (W_ROWS, H) packed weights/biases (f32)
        # out_ref: (ROWS, 2O)  time-major head outputs [mu | var]
        # hid_ref: (ROWS, H)   VMEM scratch, time-major head inputs
        f32 = jnp.float32
        bf16 = jnp.bfloat16

        # ---- unpack weights (static slices); one-time bf16 casts for the MXU
        w_att1 = w_ref[r_att1:r_att1 + I2, :].astype(bf16)       # (I2, H)
        w_ih = w_ref[r_ih:r_ih + I2, :].astype(bf16)             # (I2, H)
        w_hh = w_ref[r_hh:r_hh + H, :]                           # (H, H) f32
        w_fc = w_ref[r_fc:r_fc + H, :].astype(bf16)              # (H, H)
        w_att2 = w_ref[r_att2:r_att2 + I2, :].astype(bf16)       # (I2, H)
        w_hd = w_ref[r_heads:r_heads + twoO, :].astype(bf16)     # (2O, H)
        b_att1 = w_ref[r_b + 0:r_b + 1, :]
        bn_g = w_ref[r_b + 1:r_b + 2, :]
        bn_b = w_ref[r_b + 2:r_b + 3, :]
        b_rnn = w_ref[r_b + 3:r_b + 4, :]                        # b_ih + b_hh
        b_fc = w_ref[r_b + 4:r_b + 5, :]
        b_att2 = w_ref[r_b + 5:r_b + 6, 0:I2]
        b_hd = w_ref[r_b + 6:r_b + 7, 0:twoO]

        flat = xs_ref[0:TB, 0:I2]                                # (T*B, 2I) f32

        # ---- attention: Conv1d(k=1) -> BN(train) -> tanh -> Conv1d(k=1) -> softmax
        a1 = jnp.dot(flat.astype(bf16), w_att1,
                     preferred_element_type=f32) + b_att1        # (T*B, H)
        mean = jnp.mean(a1, axis=0, keepdims=True)
        bvar = jnp.mean((a1 - mean) ** 2, axis=0, keepdims=True)  # biased, train
        a1t = jnp.tanh((a1 - mean) * lax.rsqrt(bvar + BN_EPS) * bn_g + bn_b)
        a2 = _dot_t(a1t.astype(bf16), w_att2) + b_att2           # (T*B, 2I)
        a2 = a2 - jnp.max(a2, axis=-1, keepdims=True)
        e = jnp.exp(a2)
        att = e / jnp.sum(e, axis=-1, keepdims=True)             # exact softmax

        xw = flat * att                                          # (T*B, 2I) f32

        # ---- hoisted input projection: one matmul for all time steps
        x_proj = jnp.dot(xw.astype(bf16), w_ih,
                         preferred_element_type=f32) + b_rnn     # (T*B, H)

        # ---- seed hid scratch (time-major head-input layout):
        #        row t*B + b       -> t == 0: h0_mu[b];  t >= 1: r[b, t-1]
        #        rows T*B:T*B+B    -> h0_var  (feeds var output at t = 0)
        #        rows T*B+B:ROWS   -> zeros   (padding, discarded)
        hid_ref[pl.ds(0, B), :] = xs_ref[pl.ds(TB, B), :]            # h0_mu
        hid_ref[pl.ds(TB, ROWS - TB), :] = jnp.zeros((ROWS - TB, H), f32)
        hid_ref[pl.ds(TB, B), :] = xs_ref[pl.ds(TB + B, B), :]       # h0_var

        # ---- tanh RNN recurrence (h0 = 0, PyTorch default).  r[:, T-1] is
        #      unused by the module's output, so only T-1 steps are computed.
        h = jnp.zeros((B, H), f32)
        for s in range(T - 1):
            h = jnp.tanh(x_proj[s * B:(s + 1) * B, :]
                         + jnp.dot(h, w_hh, preferred_element_type=f32))
            hid_ref[pl.ds((s + 1) * B, B), :] = h       # ONE (B, H) store / step

        # ---- fused dense heads: one fc matmul + one [w_mu; w_var] matmul
        head_in = hid_ref[...].astype(bf16)                          # (ROWS, H)
        d = jnp.maximum(
            jnp.dot(head_in, w_fc, preferred_element_type=f32) + b_fc, 0.0)
        z = _dot_t(d.astype(bf16), w_hd) + b_hd                      # (ROWS, 2O)

        # softplus only on the var lanes
        lane = lax.broadcasted_iota(jnp.int32, z.shape, 1)
        z = jnp.where(lane >= O, jnp.logaddexp(z, 0.0), z)

        out_ref[...] = z                                             # single store

    return kernel


# ---------------------------------------------------------------------------
# Host-side parameter packing (done once): single f32 weight mega-slab.
# ---------------------------------------------------------------------------
def pack_params(p):
    H = p["w_hh"].shape[0]
    D = p["w_fc"].shape[0]
    I2 = p["w_att1"].shape[1]
    O = p["w_mu"].shape[0]
    assert D == H, "packing assumes n_hidden_dense == n_hidden"
    assert I2 <= H and 2 * O <= H

    def pad_row(r):
        return jnp.pad(r, ((0, 0), (0, H - r.shape[1])))

    bias_rnn = p["b_ih"] + p["b_hh"]
    w_heads = jnp.concatenate([p["w_mu"], p["w_var"]], axis=0)      # (2O, D)
    b_heads = jnp.concatenate([p["b_mu"], p["b_var"]], axis=1)      # (1, 2O)

    total = _slab_rows(I2, O, H)[-1]
    slab = jnp.concatenate([
        p["w_att1"].T,            # (I2, H)
        p["w_ih"].T,              # (I2, H)
        p["w_hh"].T,              # (H, H)
        p["w_fc"].T,              # (H, D)
        p["w_att2"],              # (I2, H)  row (out, in) form
        w_heads,                  # (2O, D)  row (out, in) form
        p["b_att1"], p["bn_g"], p["bn_b"], bias_rnn, p["b_fc"],
        pad_row(p["b_att2"]), pad_row(b_heads),
    ], axis=0).astype(jnp.float32)
    slab = jnp.concatenate(
        [slab, jnp.zeros((total - slab.shape[0], H), jnp.float32)], axis=0)
    return {"w_slab": slab}


# ---------------------------------------------------------------------------
# Wrapper
# ---------------------------------------------------------------------------
@jax.jit
def rnn_model_forward(y, x_hat, h0_mu, h0_var, packed):
    B, T, I = y.shape
    I2 = 2 * I
    O = OUTPUT_SIZE
    twoO = 2 * O
    H = packed["w_slab"].shape[1]
    TB = T * B
    ROWS = _pad8(TB + B)
    XROWS = _pad8(TB + 2 * B)
    w_rows = _slab_rows(I2, O, H)[-1]

    # Per-instance input slab: time-major rnn_in (lane-padded to H) + h0 rows.
    rnn_in = jnp.concatenate([y - x_hat, x_hat], axis=-1)            # (B, T, 2I)
    x_tm = jnp.transpose(rnn_in, (1, 0, 2)).reshape(TB, I2)          # (T*B, 2I)
    x_pad = jnp.pad(x_tm, ((0, 0), (0, H - I2)))                     # (T*B, H)
    xs = jnp.concatenate(
        [x_pad, h0_mu, h0_var,
         jnp.zeros((XROWS - TB - 2 * B, H), jnp.float32)], axis=0)   # (XROWS, H)
    xs = xs[None]                                                    # (N=1, ...)
    N = xs.shape[0]

    kernel = _make_kernel(B, T, I2, O, H)
    out = pl.pallas_call(
        kernel,
        out_shape=jax.ShapeDtypeStruct((N, ROWS, twoO), jnp.float32),
        grid=(N,),
        in_specs=[
            pl.BlockSpec((None, XROWS, H), lambda n: (n, 0, 0)),     # per-instance
            pl.BlockSpec((w_rows, H), lambda n: (0, 0)),             # resident weights
        ],
        out_specs=pl.BlockSpec((None, ROWS, twoO), lambda n: (n, 0, 0)),
        scratch_shapes=[pltpu.VMEM((ROWS, H), jnp.float32)],
        compiler_params=pltpu.CompilerParams(
            dimension_semantics=("parallel",)),                      # v7x 2-TC sharding
    )(xs, packed["w_slab"])

    # Time-major -> batch-first reorder + t=0 var fixup (tiny XLA ops).
    z = out[0]                                                       # (ROWS, 2O)
    main = z[:TB].reshape(T, B, twoO).transpose(1, 0, 2)             # (B, T, 2O)
    mu = main[..., :O]                                               # t=0 row = h0_mu head
    var_t0 = z[TB:TB + B, O:]                                        # h0_var head
    vars_ = jnp.concatenate([var_t0[:, None, :], main[:, 1:, O:]], axis=1)
    return mu, vars_


# ---------------------------------------------------------------------------
# Pure-JAX reference (f32, HIGHEST precision), used as a correctness oracle
# ---------------------------------------------------------------------------
def ref_forward(y, x_hat, h0_mu, h0_var, p):
    B, T, I = y.shape
    hp = jax.lax.Precision.HIGHEST
    rnn_in = jnp.concatenate([y - x_hat, x_hat], axis=-1)
    flat = rnn_in.reshape(B * T, 2 * I)
    a1 = flat @ p["w_att1"].T + p["b_att1"]
    mean = jnp.mean(a1, axis=0, keepdims=True)
    var = jnp.mean((a1 - mean) ** 2, axis=0, keepdims=True)
    a1 = jnp.tanh((a1 - mean) / jnp.sqrt(var + BN_EPS) * p["bn_g"] + p["bn_b"])
    a2 = a1 @ p["w_att2"].T + p["b_att2"]
    att = jax.nn.softmax(a2, axis=-1)
    x_seq = (flat * att).reshape(B, T, 2 * I)

    h = jnp.zeros((B, p["w_ih"].shape[0]), jnp.float32)
    outs = []
    for t in range(T):
        h = jnp.tanh(jnp.dot(x_seq[:, t, :], p["w_ih"].T, precision=hp)
                     + jnp.dot(h, p["w_hh"].T, precision=hp)
                     + p["b_ih"] + p["b_hh"])
        outs.append(h)
    r = jnp.stack(outs, axis=1)                        # (B, T, H)

    def dense_relu(x):
        return jnp.maximum(jnp.dot(x, p["w_fc"].T, precision=hp) + p["b_fc"], 0.0)

    d = dense_relu(r)
    mu_2T = jnp.dot(d, p["w_mu"].T, precision=hp) + p["b_mu"]
    var_2T = jax.nn.softplus(jnp.dot(d, p["w_var"].T, precision=hp) + p["b_var"])
    mu_1 = (jnp.dot(dense_relu(h0_mu), p["w_mu"].T, precision=hp) + p["b_mu"])[:, None, :]
    var_1 = jax.nn.softplus(
        jnp.dot(dense_relu(h0_var), p["w_var"].T, precision=hp) + p["b_var"])[:, None, :]
    mu = jnp.concatenate([mu_1, mu_2T[:, :-1, :]], axis=1)
    vars_ = jnp.concatenate([var_1, var_2T[:, :-1, :]], axis=1)
    return mu, vars_


# ---------------------------------------------------------------------------
# Deterministic parameter initialization (PyTorch-style uniform(-k, k))
# ---------------------------------------------------------------------------
def init_params(key):
    ks = jax.random.split(key, 16)
    I2, H, D, O = 2 * INPUT_SIZE, N_HIDDEN, N_HIDDEN_DENSE, OUTPUT_SIZE

    def u(k, shape, fan_in):
        bound = 1.0 / jnp.sqrt(fan_in)
        return jax.random.uniform(k, shape, jnp.float32, -bound, bound)

    return {
        # attention conv1d(2I -> H, k=1) and conv1d(H -> 2I, k=1)
        "w_att1": u(ks[0], (H, I2), I2), "b_att1": u(ks[1], (1, H), I2),
        "bn_g": jnp.ones((1, H), jnp.float32), "bn_b": jnp.zeros((1, H), jnp.float32),
        "w_att2": u(ks[2], (I2, H), H), "b_att2": u(ks[3], (1, I2), H),
        # tanh RNN
        "w_ih": u(ks[4], (H, I2), H), "b_ih": u(ks[5], (1, H), H),
        "w_hh": u(ks[6], (H, H), H), "b_hh": u(ks[7], (1, H), H),
        # dense heads
        "w_fc": u(ks[8], (D, H), H), "b_fc": u(ks[9], (1, D), H),
        "w_mu": u(ks[10], (O, D), D), "b_mu": u(ks[11], (1, O), D),
        "w_var": u(ks[12], (O, D), D), "b_var": u(ks[13], (1, O), D),
    }


if __name__ == "__main__":
    key = jax.random.PRNGKey(0)
    k_y, k_x, k_p, k_h0a, k_h0b = jax.random.split(key, 5)

    y = jax.random.normal(k_y, (BATCH, SEQ, INPUT_SIZE), jnp.float32)
    x_hat = jax.random.normal(k_x, (BATCH, SEQ, INPUT_SIZE), jnp.float32)
    params = init_params(k_p)
    packed = pack_params(params)

    # PyTorch calls init_h0 twice (two independent torch.randn draws); mirror
    # that deterministically.  Only the last layer's slice is used.
    h0_mu = jax.random.normal(k_h0a, (N_LAYERS, BATCH, N_HIDDEN), jnp.float32)[-1]
    h0_var = jax.random.normal(k_h0b, (N_LAYERS, BATCH, N_HIDDEN), jnp.float32)[-1]

    mu, vars_ = rnn_model_forward(y, x_hat, h0_mu, h0_var, packed)
    jax.block_until_ready((mu, vars_))

    mu_ref, vars_ref = ref_forward(y, x_hat, h0_mu, h0_var, params)
    assert mu.shape == (BATCH, SEQ, OUTPUT_SIZE)
    assert vars_.shape == (BATCH, SEQ, OUTPUT_SIZE)
    # bf16 MXU operands (applied per the perf review) bound matmul accuracy to
    # ~1e-3 relative; validate against the f32-HIGHEST reference at 1e-2.
    assert jnp.allclose(mu, mu_ref, atol=1e-2, rtol=1e-2)
    assert jnp.allclose(vars_, vars_ref, atol=1e-2, rtol=1e-2)
    print("KERNEL_OK")
</pallas_src>

<mosaic_0001>
module attributes {stable_mosaic.version = 11 : i64} {
  func.func @kernel(%arg0: i32, %arg1: memref<1x24x32xf32, #tpu.memory_space<vmem>>, %arg2: memref<104x32xf32, #tpu.memory_space<vmem>>, %arg3: memref<1x24x8xf32, #tpu.memory_space<vmem>>, %arg4: memref<24x32xf32, #tpu.memory_space<vmem>>) attributes {dimension_semantics = [#tpu.dimension_semantics<parallel>], iteration_bounds = array<i64: 1>, scalar_prefetch = 0 : i64, scratch_operands = 1 : i64, tpu.core_type = #tpu.core_type<tc>, window_params = [{transform_indices = @transform_0, window_bounds = array<i64: 1, 24, 32>}, {pipeline_mode = #tpu.pipeline_mode<synchronous>, transform_indices = @transform_1, window_bounds = array<i64: 104, 32>}, {transform_indices = @transform_2, window_bounds = array<i64: 1, 24, 8>}]} {
    %c0 = arith.constant 0 : index
    %c0_0 = arith.constant 0 : index
    %0 = vector.load %arg2[%c0, %c0_0] : memref<104x32xf32, #tpu.memory_space<vmem>>, vector<8x32xf32>
    %1 = arith.truncf %0 : vector<8x32xf32> to vector<8x32xbf16>
    %c8 = arith.constant 8 : index
    %c0_1 = arith.constant 0 : index
    %2 = vector.load %arg2[%c8, %c0_1] : memref<104x32xf32, #tpu.memory_space<vmem>>, vector<8x32xf32>
    %3 = arith.truncf %2 : vector<8x32xf32> to vector<8x32xbf16>
    %c16 = arith.constant 16 : index
    %c0_2 = arith.constant 0 : index
    %4 = vector.load %arg2[%c16, %c0_2] : memref<104x32xf32, #tpu.memory_space<vmem>>, vector<32x32xf32>
    %c48 = arith.constant 48 : index
    %c0_3 = arith.constant 0 : index
    %5 = vector.load %arg2[%c48, %c0_3] : memref<104x32xf32, #tpu.memory_space<vmem>>, vector<32x32xf32>
    %6 = arith.truncf %5 : vector<32x32xf32> to vector<32x32xbf16>
    %c80 = arith.constant 80 : index
    %c0_4 = arith.constant 0 : index
    %7 = vector.load %arg2[%c80, %c0_4] : memref<104x32xf32, #tpu.memory_space<vmem>>, vector<8x32xf32>
    %8 = arith.truncf %7 : vector<8x32xf32> to vector<8x32xbf16>
    %c88 = arith.constant 88 : index
    %c0_5 = arith.constant 0 : index
    %9 = vector.load %arg2[%c88, %c0_5] : memref<104x32xf32, #tpu.memory_space<vmem>>, vector<8x32xf32>
    %10 = arith.truncf %9 : vector<8x32xf32> to vector<8x32xbf16>
    %c96 = arith.constant 96 : index
    %c0_6 = arith.constant 0 : index
    %11 = vector.load %arg2[%c96, %c0_6] : memref<104x32xf32, #tpu.memory_space<vmem>>, vector<1x32xf32>
    %c97 = arith.constant 97 : index
    %c0_7 = arith.constant 0 : index
    %12 = vector.load %arg2[%c97, %c0_7] : memref<104x32xf32, #tpu.memory_space<vmem>>, vector<1x32xf32>
    %c98 = arith.constant 98 : index
    %c0_8 = arith.constant 0 : index
    %13 = vector.load %arg2[%c98, %c0_8] : memref<104x32xf32, #tpu.memory_space<vmem>>, vector<1x32xf32>
    %c99 = arith.constant 99 : index
    %c0_9 = arith.constant 0 : index
    %14 = vector.load %arg2[%c99, %c0_9] : memref<104x32xf32, #tpu.memory_space<vmem>>, vector<1x32xf32>
    %c100 = arith.constant 100 : index
    %c0_10 = arith.constant 0 : index
    %15 = vector.load %arg2[%c100, %c0_10] : memref<104x32xf32, #tpu.memory_space<vmem>>, vector<1x32xf32>
    %c101 = arith.constant 101 : index
    %c0_11 = arith.constant 0 : index
    %16 = vector.load %arg2[%c101, %c0_11] : memref<104x32xf32, #tpu.memory_space<vmem>>, vector<1x8xf32>
    %c102 = arith.constant 102 : index
    %c0_12 = arith.constant 0 : index
    %17 = vector.load %arg2[%c102, %c0_12] : memref<104x32xf32, #tpu.memory_space<vmem>>, vector<1x8xf32>
    %c0_13 = arith.constant 0 : index
    %c0_14 = arith.constant 0 : index
    %c0_15 = arith.constant 0 : index
    %18 = vector.load %arg1[%c0_13, %c0_14, %c0_15] : memref<1x24x32xf32, #tpu.memory_space<vmem>>, vector<1x16x8xf32>
    %19 = vector.shape_cast %18 : vector<1x16x8xf32> to vector<16x8xf32>
    %20 = arith.truncf %19 : vector<16x8xf32> to vector<16x8xbf16>
    %cst = arith.constant dense<0.000000e+00> : vector<16x32xf32>
    %21 = tpu.matmul %20, %1, %cst {dimension_numbers = #tpu.dot_dimension_numbers<[1], [0], [0], [1], [0, 0, 1, 1], [], []>} : vector<16x8xbf16>, vector<8x32xbf16>, vector<16x32xf32> -> vector<16x32xf32>
    %22 = vector.broadcast %11 : vector<1x32xf32> to vector<16x32xf32>
    %23 = arith.addf %21, %22 : vector<16x32xf32>
    %cst_16 = arith.constant dense<0.000000e+00> : vector<32xf32>
    %24 = vector.multi_reduction <add>, %23, %cst_16 [0] : vector<16x32xf32> to vector<32xf32>
    %25 = vector.shape_cast %24 : vector<32xf32> to vector<1x32xf32>
    %cst_17 = arith.constant 1.600000e+01 : f32
    %26 = vector.broadcast %cst_17 : f32 to vector<1x32xf32>
    %27 = arith.divf %25, %26 : vector<1x32xf32>
    %28 = vector.broadcast %27 : vector<1x32xf32> to vector<16x32xf32>
    %29 = arith.subf %23, %28 : vector<16x32xf32>
    %30 = arith.mulf %29, %29 : vector<16x32xf32>
    %cst_18 = arith.constant dense<0.000000e+00> : vector<32xf32>
    %31 = vector.multi_reduction <add>, %30, %cst_18 [0] : vector<16x32xf32> to vector<32xf32>
    %32 = vector.shape_cast %31 : vector<32xf32> to vector<1x32xf32>
    %cst_19 = arith.constant 1.600000e+01 : f32
    %33 = vector.broadcast %cst_19 : f32 to vector<1x32xf32>
    %34 = arith.divf %32, %33 : vector<1x32xf32>
    %35 = vector.broadcast %27 : vector<1x32xf32> to vector<16x32xf32>
    %36 = arith.subf %23, %35 : vector<16x32xf32>
    %cst_20 = arith.constant 9.99999974E-6 : f32
    %37 = vector.broadcast %cst_20 : f32 to vector<1x32xf32>
    %38 = arith.addf %34, %37 : vector<1x32xf32>
    %39 = math.rsqrt %38 : vector<1x32xf32>
    %40 = vector.broadcast %39 : vector<1x32xf32> to vector<16x32xf32>
    %41 = arith.mulf %36, %40 : vector<16x32xf32>
    %42 = vector.broadcast %12 : vector<1x32xf32> to vector<16x32xf32>
    %43 = arith.mulf %41, %42 : vector<16x32xf32>
    %44 = vector.broadcast %13 : vector<1x32xf32> to vector<16x32xf32>
    %45 = arith.addf %43, %44 : vector<16x32xf32>
    %46 = math.tanh %45 : vector<16x32xf32>
    %47 = arith.truncf %46 : vector<16x32xf32> to vector<16x32xbf16>
    %cst_21 = arith.constant dense<0.000000e+00> : vector<16x8xf32>
    %48 = tpu.matmul %47, %8, %cst_21 {dimension_numbers = #tpu.dot_dimension_numbers<[1], [1], [0], [0], [0, 0, 1, 0], [], []>} : vector<16x32xbf16>, vector<8x32xbf16>, vector<16x8xf32> -> vector<16x8xf32>
    %49 = vector.broadcast %16 : vector<1x8xf32> to vector<16x8xf32>
    %50 = arith.addf %48, %49 : vector<16x8xf32>
    %cst_22 = arith.constant dense<0xFF800000> : vector<16xf32>
    %51 = vector.multi_reduction <maximumf>, %50, %cst_22 [1] : vector<16x8xf32> to vector<16xf32>
    %52 = vector.shape_cast %51 : vector<16xf32> to vector<16x1xf32>
    %53 = vector.broadcast %52 : vector<16x1xf32> to vector<16x8xf32>
    %54 = arith.subf %50, %53 : vector<16x8xf32>
    %55 = math.exp %54 : vector<16x8xf32>
    %cst_23 = arith.constant dense<0.000000e+00> : vector<16xf32>
    %56 = vector.multi_reduction <add>, %55, %cst_23 [1] : vector<16x8xf32> to vector<16xf32>
    %57 = vector.shape_cast %56 : vector<16xf32> to vector<16x1xf32>
    %58 = vector.broadcast %57 : vector<16x1xf32> to vector<16x8xf32>
    %59 = arith.divf %55, %58 : vector<16x8xf32>
    %60 = arith.mulf %19, %59 : vector<16x8xf32>
    %61 = arith.truncf %60 : vector<16x8xf32> to vector<16x8xbf16>
    %cst_24 = arith.constant dense<0.000000e+00> : vector<16x32xf32>
    %62 = tpu.matmul %61, %3, %cst_24 {dimension_numbers = #tpu.dot_dimension_numbers<[1], [0], [0], [1], [0, 0, 1, 1], [], []>} : vector<16x8xbf16>, vector<8x32xbf16>, vector<16x32xf32> -> vector<16x32xf32>
    %63 = vector.broadcast %14 : vector<1x32xf32> to vector<16x32xf32>
    %64 = arith.addf %62, %63 : vector<16x32xf32>
    %c0_25 = arith.constant 0 : index
    %c16_26 = arith.constant 16 : index
    %c0_27 = arith.constant 0 : index
    %65 = vector.load %arg1[%c0_25, %c16_26, %c0_27] : memref<1x24x32xf32, #tpu.memory_space<vmem>>, vector<1x2x32xf32>
    %66 = vector.shape_cast %65 : vector<1x2x32xf32> to vector<2x32xf32>
    %c0_28 = arith.constant 0 : index
    %c0_29 = arith.constant 0 : index
    %67 = vector.load %arg4[%c0_28, %c0_29] : memref<24x32xf32, #tpu.memory_space<vmem>>, vector<2x32xf32>
    tpu.vector_store %arg4[%c0_28, %c0_29], %66 {strides = array<i32>} : memref<24x32xf32, #tpu.memory_space<vmem>>, vector<2x32xf32>,
    %cst_30 = arith.constant 0.000000e+00 : f32
    %68 = vector.broadcast %cst_30 : f32 to vector<8x32xf32>
    %c16_31 = arith.constant 16 : index
    %c0_32 = arith.constant 0 : index
    %69 = vector.load %arg4[%c16_31, %c0_32] : memref<24x32xf32, #tpu.memory_space<vmem>>, vector<8x32xf32>
    tpu.vector_store %arg4[%c16_31, %c0_32], %68 {strides = array<i32>} : memref<24x32xf32, #tpu.memory_space<vmem>>, vector<8x32xf32>,
    %c0_33 = arith.constant 0 : index
    %c18 = arith.constant 18 : index
    %c0_34 = arith.constant 0 : index
    %70 = vector.load %arg1[%c0_33, %c18, %c0_34] : memref<1x24x32xf32, #tpu.memory_space<vmem>>, vector<1x2x32xf32>
    %71 = vector.shape_cast %70 : vector<1x2x32xf32> to vector<2x32xf32>
    %c16_35 = arith.constant 16 : index
    %c0_36 = arith.constant 0 : index
    %72 = vector.load %arg4[%c16_35, %c0_36] : memref<24x32xf32, #tpu.memory_space<vmem>>, vector<2x32xf32>
    tpu.vector_store %arg4[%c16_35, %c0_36], %71 {strides = array<i32>} : memref<24x32xf32, #tpu.memory_space<vmem>>, vector<2x32xf32>,
    %cst_37 = arith.constant 0.000000e+00 : f32
    %73 = vector.broadcast %cst_37 : f32 to vector<2x32xf32>
    %74 = vector.extract_strided_slice %64 {offsets = [0, 0], sizes = [2, 32], strides = [1, 1]} : vector<16x32xf32> to vector<2x32xf32>
    %cst_38 = arith.constant dense<0.000000e+00> : vector<2x32xf32>
    %75 = tpu.matmul %73, %4, %cst_38 {dimension_numbers = #tpu.dot_dimension_numbers<[1], [0], [0], [1], [0, 0, 1, 1], [], []>} : vector<2x32xf32>, vector<32x32xf32>, vector<2x32xf32> -> vector<2x32xf32>
    %76 = arith.addf %74, %75 : vector<2x32xf32>
    %77 = math.tanh %76 : vector<2x32xf32>
    %c2 = arith.constant 2 : index
    %c0_39 = arith.constant 0 : index
    %78 = vector.load %arg4[%c2, %c0_39] : memref<24x32xf32, #tpu.memory_space<vmem>>, vector<2x32xf32>
    tpu.vector_store %arg4[%c2, %c0_39], %77 {strides = array<i32>} : memref<24x32xf32, #tpu.memory_space<vmem>>, vector<2x32xf32>,
    %79 = vector.extract_strided_slice %64 {offsets = [2, 0], sizes = [2, 32], strides = [1, 1]} : vector<16x32xf32> to vector<2x32xf32>
    %cst_40 = arith.constant dense<0.000000e+00> : vector<2x32xf32>
    %80 = tpu.matmul %77, %4, %cst_40 {dimension_numbers = #tpu.dot_dimension_numbers<[1], [0], [0], [1], [0, 0, 1, 1], [], []>} : vector<2x32xf32>, vector<32x32xf32>, vector<2x32xf32> -> vector<2x32xf32>
    %81 = arith.addf %79, %80 : vector<2x32xf32>
    %82 = math.tanh %81 : vector<2x32xf32>
    %c4 = arith.constant 4 : index
    %c0_41 = arith.constant 0 : index
    %83 = vector.load %arg4[%c4, %c0_41] : memref<24x32xf32, #tpu.memory_space<vmem>>, vector<2x32xf32>
    tpu.vector_store %arg4[%c4, %c0_41], %82 {strides = array<i32>} : memref<24x32xf32, #tpu.memory_space<vmem>>, vector<2x32xf32>,
    %84 = vector.extract_strided_slice %64 {offsets = [4, 0], sizes = [2, 32], strides = [1, 1]} : vector<16x32xf32> to vector<2x32xf32>
    %cst_42 = arith.constant dense<0.000000e+00> : vector<2x32xf32>
    %85 = tpu.matmul %82, %4, %cst_42 {dimension_numbers = #tpu.dot_dimension_numbers<[1], [0], [0], [1], [0, 0, 1, 1], [], []>} : vector<2x32xf32>, vector<32x32xf32>, vector<2x32xf32> -> vector<2x32xf32>
    %86 = arith.addf %84, %85 : vector<2x32xf32>
    %87 = math.tanh %86 : vector<2x32xf32>
    %c6 = arith.constant 6 : index
    %c0_43 = arith.constant 0 : index
    %88 = vector.load %arg4[%c6, %c0_43] : memref<24x32xf32, #tpu.memory_space<vmem>>, vector<2x32xf32>
    tpu.vector_store %arg4[%c6, %c0_43], %87 {strides = array<i32>} : memref<24x32xf32, #tpu.memory_space<vmem>>, vector<2x32xf32>,
    %89 = vector.extract_strided_slice %64 {offsets = [6, 0], sizes = [2, 32], strides = [1, 1]} : vector<16x32xf32> to vector<2x32xf32>
    %cst_44 = arith.constant dense<0.000000e+00> : vector<2x32xf32>
    %90 = tpu.matmul %87, %4, %cst_44 {dimension_numbers = #tpu.dot_dimension_numbers<[1], [0], [0], [1], [0, 0, 1, 1], [], []>} : vector<2x32xf32>, vector<32x32xf32>, vector<2x32xf32> -> vector<2x32xf32>
    %91 = arith.addf %89, %90 : vector<2x32xf32>
    %92 = math.tanh %91 : vector<2x32xf32>
    %c8_45 = arith.constant 8 : index
    %c0_46 = arith.constant 0 : index
    %93 = vector.load %arg4[%c8_45, %c0_46] : memref<24x32xf32, #tpu.memory_space<vmem>>, vector<2x32xf32>
    tpu.vector_store %arg4[%c8_45, %c0_46], %92 {strides = array<i32>} : memref<24x32xf32, #tpu.memory_space<vmem>>, vector<2x32xf32>,
    %94 = vector.extract_strided_slice %64 {offsets = [8, 0], sizes = [2, 32], strides = [1, 1]} : vector<16x32xf32> to vector<2x32xf32>
    %cst_47 = arith.constant dense<0.000000e+00> : vector<2x32xf32>
    %95 = tpu.matmul %92, %4, %cst_47 {dimension_numbers = #tpu.dot_dimension_numbers<[1], [0], [0], [1], [0, 0, 1, 1], [], []>} : vector<2x32xf32>, vector<32x32xf32>, vector<2x32xf32> -> vector<2x32xf32>
    %96 = arith.addf %94, %95 : vector<2x32xf32>
    %97 = math.tanh %96 : vector<2x32xf32>
    %c10 = arith.constant 10 : index
    %c0_48 = arith.constant 0 : index
    %98 = vector.load %arg4[%c10, %c0_48] : memref<24x32xf32, #tpu.memory_space<vmem>>, vector<2x32xf32>
    tpu.vector_store %arg4[%c10, %c0_48], %97 {strides = array<i32>} : memref<24x32xf32, #tpu.memory_space<vmem>>, vector<2x32xf32>,
    %99 = vector.extract_strided_slice %64 {offsets = [10, 0], sizes = [2, 32], strides = [1, 1]} : vector<16x32xf32> to vector<2x32xf32>
    %cst_49 = arith.constant dense<0.000000e+00> : vector<2x32xf32>
    %100 = tpu.matmul %97, %4, %cst_49 {dimension_numbers = #tpu.dot_dimension_numbers<[1], [0], [0], [1], [0, 0, 1, 1], [], []>} : vector<2x32xf32>, vector<32x32xf32>, vector<2x32xf32> -> vector<2x32xf32>
    %101 = arith.addf %99, %100 : vector<2x32xf32>
    %102 = math.tanh %101 : vector<2x32xf32>
    %c12 = arith.constant 12 : index
    %c0_50 = arith.constant 0 : index
    %103 = vector.load %arg4[%c12, %c0_50] : memref<24x32xf32, #tpu.memory_space<vmem>>, vector<2x32xf32>
    tpu.vector_store %arg4[%c12, %c0_50], %102 {strides = array<i32>} : memref<24x32xf32, #tpu.memory_space<vmem>>, vector<2x32xf32>,
    %104 = vector.extract_strided_slice %64 {offsets = [12, 0], sizes = [2, 32], strides = [1, 1]} : vector<16x32xf32> to vector<2x32xf32>
    %cst_51 = arith.constant dense<0.000000e+00> : vector<2x32xf32>
    %105 = tpu.matmul %102, %4, %cst_51 {dimension_numbers = #tpu.dot_dimension_numbers<[1], [0], [0], [1], [0, 0, 1, 1], [], []>} : vector<2x32xf32>, vector<32x32xf32>, vector<2x32xf32> -> vector<2x32xf32>
    %106 = arith.addf %104, %105 : vector<2x32xf32>
    %107 = math.tanh %106 : vector<2x32xf32>
    %c14 = arith.constant 14 : index
    %c0_52 = arith.constant 0 : index
    %108 = vector.load %arg4[%c14, %c0_52] : memref<24x32xf32, #tpu.memory_space<vmem>>, vector<2x32xf32>
    tpu.vector_store %arg4[%c14, %c0_52], %107 {strides = array<i32>} : memref<24x32xf32, #tpu.memory_space<vmem>>, vector<2x32xf32>,
    %c0_53 = arith.constant 0 : index
    %c0_54 = arith.constant 0 : index
    %109 = vector.load %arg4[%c0_53, %c0_54] : memref<24x32xf32, #tpu.memory_space<vmem>>, vector<24x32xf32>
    %110 = arith.truncf %109 : vector<24x32xf32> to vector<24x32xbf16>
    %cst_55 = arith.constant dense<0.000000e+00> : vector<24x32xf32>
    %111 = tpu.matmul %110, %6, %cst_55 {dimension_numbers = #tpu.dot_dimension_numbers<[1], [0], [0], [1], [0, 0, 1, 1], [], []>} : vector<24x32xbf16>, vector<32x32xbf16>, vector<24x32xf32> -> vector<24x32xf32>
    %112 = vector.broadcast %15 : vector<1x32xf32> to vector<24x32xf32>
    %113 = arith.addf %111, %112 : vector<24x32xf32>
    %cst_56 = arith.constant 0.000000e+00 : f32
    %114 = vector.broadcast %cst_56 : f32 to vector<24x32xf32>
    %115 = arith.maximumf %113, %114 : vector<24x32xf32>
    %116 = arith.truncf %115 : vector<24x32xf32> to vector<24x32xbf16>
    %cst_57 = arith.constant dense<0.000000e+00> : vector<24x8xf32>
    %117 = tpu.matmul %116, %10, %cst_57 {dimension_numbers = #tpu.dot_dimension_numbers<[1], [1], [0], [0], [0, 0, 1, 0], [], []>} : vector<24x32xbf16>, vector<8x32xbf16>, vector<24x8xf32> -> vector<24x8xf32>
    %118 = vector.broadcast %17 : vector<1x8xf32> to vector<24x8xf32>
    %119 = arith.addf %117, %118 : vector<24x8xf32>
    %120 = tpu.iota {dimensions = array<i32: 1>} : vector<24x8xi32>
    %c4_i32 = arith.constant 4 : i32
    %121 = vector.broadcast %c4_i32 : i32 to vector<24x8xi32>
    %122 = arith.cmpi sge, %120, %121 : vector<24x8xi32>
    %cst_58 = arith.constant 0.000000e+00 : f32
    %123 = vector.broadcast %cst_58 : f32 to vector<24x8xf32>
    %124 = arith.maximumf %119, %123 : vector<24x8xf32>
    %125 = vector.broadcast %cst_58 : f32 to vector<24x8xf32>
    %126 = arith.subf %119, %125 : vector<24x8xf32>
    %127 = arith.cmpf one, %126, %126 : vector<24x8xf32>
    %128 = vector.broadcast %cst_58 : f32 to vector<24x8xf32>
    %129 = arith.addf %119, %128 : vector<24x8xf32>
    %130 = math.absf %126 : vector<24x8xf32>
    %cst_59 = arith.constant 0.000000e+00 : f32
    %131 = vector.broadcast %cst_59 : f32 to vector<24x8xf32>
    %132 = arith.subf %131, %130 : vector<24x8xf32>
    %133 = math.exp %132 : vector<24x8xf32>
    %134 = math.log1p %133 : vector<24x8xf32>
    %135 = arith.addf %124, %134 : vector<24x8xf32>
    %136 = arith.select %127, %129, %135 : vector<24x8xi1>, vector<24x8xf32>
    %137 = arith.select %122, %136, %119 : vector<24x8xi1>, vector<24x8xf32>
    %c0_60 = arith.constant 0 : index
    %c0_61 = arith.constant 0 : index
    %c0_62 = arith.constant 0 : index
    %138 = vector.load %arg3[%c0_60, %c0_61, %c0_62] : memref<1x24x8xf32, #tpu.memory_space<vmem>>, vector<1x24x8xf32>
    %139 = vector.shape_cast %138 : vector<1x24x8xf32> to vector<24x8xf32>
    %140 = vector.shape_cast %137 : vector<24x8xf32> to vector<1x24x8xf32>
    tpu.vector_store %arg3[%c0_60, %c0_61, %c0_62], %140 {strides = array<i32>} : memref<1x24x8xf32, #tpu.memory_space<vmem>>, vector<1x24x8xf32>,
    return
  }
  func.func @transform_0(%arg0: i32) -> (i32, i32, i32) {
    %c0_i32 = arith.constant 0 : i32
    %c0_i32_0 = arith.constant 0 : i32
    %c0_i32_1 = arith.constant 0 : i32
    return %arg0, %c0_i32, %c0_i32_0 : i32, i32, i32
  }
  func.func @transform_1(%arg0: i32) -> (i32, i32) {
    %c0_i32 = arith.constant 0 : i32
    %c0_i32_0 = arith.constant 0 : i32
    %c0_i32_1 = arith.constant 0 : i32
    return %c0_i32, %c0_i32_0 : i32, i32
  }
  func.func @transform_2(%arg0: i32) -> (i32, i32, i32) {
    %c0_i32 = arith.constant 0 : i32
    %c0_i32_0 = arith.constant 0 : i32
    %c0_i32_1 = arith.constant 0 : i32
    return %arg0, %c0_i32, %c0_i32_0 : i32, i32, i32
  }
}

</mosaic_0001>

<bundles_post_ra>
// kernel: sub.1
= control target key start
LH: loop header
LB: loop body
LE: loop exit
PB: predicated region body
PF: predicated region fallthrough
CT: control target
= control target key end

     0   :  { %3 = vsyncpa [#allocation1], 0  ;;  %s62_s9 = smov [#allocation0]   ;;  %s104_s0 = inlined_call_operand.hbm [shape: f32[2,8,4], index: 0, kind: input, shape index: {}]   ;;  %s105_s1 = inlined_call_operand.vmem [shape: f32[2,8,4], index: 1, kind: input, shape index: {}]   ;;  %s106_s2 = inlined_call_operand.vmem [shape: f32[2,8,4], index: 2, kind: output, shape index: {}]  }
   0x1   :  { %s7_s10 = sshll.u32 %s62_s9, 4  ;;  %s38_s13 = scalar_lea.hbm %s104_s0, 128  ;;  %s8_s10 = int_to_ptr.vmem [resolvable:$true] %s7_s10 }
   0x2   :  { %p39_p0 = scmp.ne.s32.totalorder %s104_s0, %s38_s13  ;;  %p42_p1 = scmp.lt.u32.totalorder %s38_s13, %s104_s0 }
   0x4   :  { %p44_p2 = pnand %p42_p1, %p39_p0 }
   0x6   :  { %47 = shalt.err (!%p44_p2)
}
   0x7   :  { %s48_s18 = scalar_lea.vmem %s8_s10, 128  ;;  %p53_p4 = scmp.lt.s32.totalorder %s8_s10, %s8_s10 }
   0x8   :  { %p49_p3 = scmp.ne.s32.totalorder %s8_s10, %s48_s18  ;;  %p54_p5 = scmp.lt.s32.totalorder %s48_s18, %s48_s18 }
   0xa   :  { %p55_p6 = por %p54_p5, %p53_p4 }
   0xc   :  { %p56_p7 = pnand %p55_p6, %p49_p3 }
   0xe   :  { %59 = shalt.err (!%p56_p7)
}
   0xf   :  { %s63_s19 = smov 64   ;;  %s64_s20 = smov 4  }
  0x10   :  { %13 = dma.hbm_to_vmem [thread:$0]  %s104_s0, 128, %s8_s10, [#allocation1], %s63_s19, %s63_s19, %s64_s20  }
  0x11   :  { %60 = dma.done.wait [#allocation1], 128  }
  0x12   :  { %61 = vsyncadd [#allocation1], 4294967168  ;;  %v15_v0 = vld [vmem:[#allocation0] sm:$0xf]  ;;  %v23_v2 = vld [vmem:[#allocation0 + $0x4] sm:$0xf] }
  0x13   :  { %v16_v1 = vld [vmem:[%s105_s1] sm:$0xf]  ;;  %v33_v4 = vld [vmem:[%s105_s1 + $0x4] sm:$0xf] }
  0x14   :  { %v19_v3 = vsub.f32 %v15_v0, %v16_v1  ;;  %v28_v5 = vsub.f32 %v23_v2, %v33_v4 }
  0x16   :  { %21 = vst [vmem:[%s106_s2] sm:$0xf] %v19_v3  ;;  %34 = vst [vmem:[%s106_s2 + $0x4] sm:$0xf] %v28_v5 }
  0x17   :  { %32 = vsyncpa [#allocation1], 1 }

// kernel: rnn_model_forward.1
= control target key start
LH: loop header
LB: loop body
LE: loop exit
PB: predicated region body
PF: predicated region fallthrough
CT: control target
= control target key end

     0   :  { %v1284_v0 = vmov 0.0   ;;  %vm48_vm0 = vcmask 1043456   ;;  %vm1285_vm1 = vmmov 0   ;;  %vm44_vm2 = vcmask 64512   ;;  %s1513_s1 = inlined_call_operand.vmem [shape: f32[104,32], index: 1, kind: input, shape index: {}]   ;;  %s1514_s0 = inlined_call_operand.vmem [shape: f32[1,24,32], index: 0, kind: input, shape index: {}]   ;;  %s1515_s2 = inlined_call_operand.vmem [shape: f32[1,24,8], index: 2, kind: output, shape index: {}]  }
   0x1   :  { %1089 = vmatprep.subr.bf16.mxu0 %v1284_v0  ;;  %v12_v1 = vld [vmem:[%s1513_s1] sm:$0xff]  ;;  %v14_v2 = vld [vmem:[%s1513_s1 + $0x8] sm:$0xff]  ;;  %1091 = vmatprep.mubr.msk.bf16.mxu0 %vm1285_vm1, %v1284_v0  ;;  %vm93_vm3 = vcmask 261120   ;;  %v26_v10 = vld [vmem:[%s1513_s1 + $0x50] sm:$0xff]  ;;  %vm266_vm4 = vcmask 254976   ;;  %vm425_vm5 = vcmask 257026  }
   0x2   :  { %v1314_v3 = vld [vmem:[%s1514_s0] sm:$0xff]  ;;  %v13_v4 = vpack.c.bf16 %v12_v1, %v12_v1  ;;  %v15_v5 = vpack.c.bf16 %v14_v2, %v14_v2  ;;  %v1319_v6 = vld [vmem:[%s1514_s0 + $0x8] sm:$0xff]  ;;  %1095 = vmatprep.subr.bf16.mxu1 %v1284_v0  ;;  %1097 = vmatprep.mubr.msk.bf16.mxu1 %vm1285_vm1, %v1284_v0  ;;  %268 = vst.msk [vmem:[#allocation2 + $0x10] sm:$0xff] %vm93_vm3, %v1284_v0  ;;  %vm506_vm6 = vcmask 259076   ;;  %vm587_vm7 = vcmask 261126  }
   0x3   :  { %v39_v8 = vpack.c.bf16 %v1319_v6, %v1314_v3  ;;  %v27_v11 = vpack.c.bf16 %v26_v10, %v26_v10  ;;  %v1021_v13 = vld [vmem:[%s1513_s1 + $0x60] ss:$0 sm:$0xff]  ;;  %v1023_v46 = vld [vmem:[%s1513_s1 + $0x61] ss:$0 sm:$0xff]  ;;  %v1024_v49 = vld [vmem:[%s1513_s1 + $0x62] ss:$0 sm:$0xff] }
   0x4   :  { %v50_v7 = vsel %vm48_vm0, %v13_v4, 0  ;;  %v222_v9 = vsel %vm48_vm0, %v15_v5, 0  ;;  %v1025_v57 = vld [vmem:[%s1513_s1 + $0x65] ss:$0 sm:$0xff] }
   0x5   :  { %1090 = vmatpush3.bf16.msra.mxu0 %v50_v7  ;;  %v146_v12 = vsel %vm93_vm3, %v27_v11, 0 }
   0x6   :  { %1101 = vmatprep.subr.bf16.mxu0 %v1284_v0  ;;  %1096 = vmatpush3.bf16.xpose.msra.mxu1 %v146_v12 }
   0x8   :  { %1092 = vmatmul.mubr.msk.bf16.vlgmr.msra.gmra.mrb[0].mxu0 %vm44_vm2, %v39_v8 }
   0x9   :  { %1102 = vmatpush3.bf16.msra.mxu0 %v222_v9  ;;  %1103 = vmatprep.mubr.msk.bf16.mxu0 %vm1285_vm1, %v1284_v0 }
  0xdb   :  { %v86_v14 = vpop.f32.mrb[0].mxu0 }
  0xdc   :  { %v87_v15 = vadd.f32 %v1021_v13, %v86_v14  ;;  %v1093_v16 = vpop.f32.mrb[1].mxu0 }
  0xdd   :  { %v89_v17 = vpop.f32.mrb[2].mxu0  ;;  %v17_v16 = vld [vmem:[%s1513_s1 + $0x18] sm:$0xff] }
  0xde   :  { %v90_v18 = vadd.f32 %v1021_v13, %v89_v17  ;;  %v1094_v19 = vpop.f32.mrb[3].mxu0  ;;  %v94_v20 = vsel %vm93_vm3, %v87_v15, 0.0 }
  0xdf   :  { %v18_v19 = vld [vmem:[%s1513_s1 + $0x20] sm:$0xff] }
  0xe0   :  { %v95_v21 = vsel %vm93_vm3, %v90_v18, 0.0 }
  0xe1   :  { %v96_v22 = vadd.f32 %v95_v21, %v94_v20  ;;  %v19_v20 = vld [vmem:[%s1513_s1 + $0x28] sm:$0xff] }
  0xe2   :  { %v1377_v21 = vpack.c.bf16 %v19_v20, %v18_v19 }
  0xe3   :  { %v97_v23 = vrot.slane %v96_v22, 4 }
  0xe5   :  { %v98_v24 = vadd.f32 %v97_v23, %v96_v22 }
  0xe7   :  { %v99_v25 = vrot.slane %v98_v24, 2 }
  0xe9   :  { %v100_v26 = vadd.f32 %v99_v25, %v98_v24 }
  0xeb   :  { %v101_v27 = vrot.slane %v100_v26, 1 }
  0xed   :  { %v102_v28 = vadd.f32 %v101_v27, %v100_v26 }
  0xef   :  { %v104_v29 = vmul.f32 0.0625, %v102_v28 }
  0xf1   :  { %v105_v30 = vsub.f32 %v87_v15, %v104_v29  ;;  %v106_v31 = vsub.f32 %v90_v18, %v104_v29  ;;  %v16_v15 = vld [vmem:[%s1513_s1 + $0x10] sm:$0xff]  ;;  %v1286_v18 = vmov 0.0|0.0  }
  0xf2   :  { %v1365_v17 = vpack.c.bf16 %v17_v16, %v16_v15  ;;  %1198 = vmatprep.subr.bf16.mxu1 %v1286_v18  ;;  %1204 = vmatprep.subr.bf16.mxu0 %v1286_v18 }
  0xf3   :  { %v107_v32 = vmul.f32 %v105_v30, %v105_v30  ;;  %v108_v33 = vmul.f32 %v106_v31, %v106_v31 }
  0xf5   :  { %v109_v34 = vsel %vm93_vm3, %v107_v32, 0.0  ;;  %v110_v35 = vsel %vm93_vm3, %v108_v33, 0.0  ;;  %v1027_v33 = vld [vmem:[%s1513_s1 + $0x63] ss:$0 sm:$0xff] }
  0xf6   :  { %v111_v36 = vadd.f32 %v110_v35, %v109_v34 }
  0xf8   :  { %v112_v37 = vrot.slane %v111_v36, 4 }
  0xfa   :  { %v113_v38 = vadd.f32 %v112_v37, %v111_v36 }
  0xfc   :  { %v114_v39 = vrot.slane %v113_v38, 2 }
  0xfe   :  { %v115_v40 = vadd.f32 %v114_v39, %v113_v38 }
 0x100   :  { %v116_v41 = vrot.slane %v115_v40, 1 }
 0x102   :  { %v117_v42 = vadd.f32 %v116_v41, %v115_v40 }
 0x104   :  { %v118_v43 = vmul.f32 0.0625, %v117_v42 }
 0x106   :  { %v119_v44 = vadd.f32 1e-05, %v118_v43 }
 0x108   :  { %1244 = vrsqrt.f32 %v119_v44 }
 0x112   :  { %v1245_v45 = vpop.eup %1244 }
 0x113   :  { %v121_v47 = vmul.f32 %v1245_v45, %v105_v30  ;;  %v122_v48 = vmul.f32 %v1245_v45, %v106_v31 }
 0x115   :  { %v127_v50 = vmul.f32 %v1023_v46, %v121_v47  ;;  %v128_v51 = vmul.f32 %v1023_v46, %v122_v48 }
 0x117   :  { %v133_v52 = vadd.f32 %v1024_v49, %v127_v50  ;;  %v134_v53 = vadd.f32 %v1024_v49, %v128_v51 }
 0x119   :  { %1246 = vtanh.f32 %v133_v52 }
 0x11a   :  { %1248 = vtanh.f32 %v134_v53 }
 0x123   :  { %v1247_v54 = vpop.eup %1246 }
 0x124   :  { %v1249_v55 = vpop.eup %1248 }
 0x125   :  { %v137_v56 = vpack.c.bf16 %v1249_v55, %v1247_v54 }
 0x127   :  { %1098 = vmatmul.mubr.msk.bf16.vlgmr.msra.gmra.mrb[0].mxu1 %vm93_vm3, %v137_v56 }
 0x128   :  { %1115 = vmatprep.mubr.msk.f32.mxu1 %vm1285_vm1, %v1284_v0  ;;  %1200 = vmatpush3.bf16.msra.mxu1 %v1365_v17 }
 0x129   :  { %1201 = vmatprep.subr.bf16.mxu1 %v1286_v18 }
 0x12c   :  { %1203 = vmatpush3.bf16.msra.mxu1 %v1377_v21 }
 0x12d   :  { %1210 = vmatprep.subr.bf16.mxu1 %v1286_v18 }
 0x12f   :  { %1116 = vmatmul.mubr.f32.vlgmr.msra.gmra.mrb[4].mxu1 %v1284_v0 }
 0x130   :  { %1212 = vmatpush3.bf16.msra.mxu1 %v1365_v17  ;;  %1137 = vmatprep.mubr.msk.f32.mxu1 %vm1285_vm1, %v1284_v0 }
 0x131   :  { %1213 = vmatprep.subr.bf16.mxu1 %v1286_v18 }
 0x134   :  { %1215 = vmatpush3.bf16.msra.mxu1 %v1377_v21 }
 0x135   :  { %1222 = vmatprep.subr.bf16.mxu1 %v1286_v18 }
 0x1fa   :  { %v182_v58 = vpop.f32.mrb[0].mxu1 }
 0x1fb   :  { %v183_v59 = vadd.f32 %v1025_v57, %v182_v58  ;;  %v1099_v60 = vpop.f32.mrb[1].mxu1 }
 0x1fc   :  { %v185_v61 = vpop.f32.mrb[2].mxu1 }
 0x1fd   :  { %v186_v62 = vadd.f32 %v1025_v57, %v185_v61  ;;  %v1100_v63 = vpop.f32.mrb[3].mxu1  ;;  %v189_v1 = vsel %vm44_vm2, %v183_v59, -inf }
 0x1fe   :  { %190 = vmax.xlane.f32.xlu0 %v189_v1 }
 0x1ff   :  { %v192_v2 = vsel %vm44_vm2, %v186_v62, -inf }
 0x202   :  { %193 = vmax.xlane.f32.xlu0 %v192_v2  ;;  %v340_v31 = vpop.f32.mrb[4].mxu1 }
 0x203   :  { %v1117_v32 = vpop.f32.mrb[5].mxu1 }
 0x28b   :  { %v191_v4 = vpop.xlane.xlu0 %190 }
 0x28c   :  { %v195_v5 = vsub.f32 %v183_v59, %v191_v4 }
 0x28e   :  { %v197_v7 = vmul.f32 1.442695, %v195_v5 }
 0x28f   :  { %v194_v8 = vpop.xlane.xlu0 %193 }
 0x290   :  { %1250 = vpow2.f32 %v197_v7  ;;  %v196_v9 = vsub.f32 %v186_v62, %v194_v8  ;;  %v20_v8 = vld [vmem:[%s1513_s1 + $0x30] sm:$0xff] }
 0x292   :  { %v199_v10 = vmul.f32 1.442695, %v196_v9  ;;  %v21_v9 = vld [vmem:[%s1513_s1 + $0x38] sm:$0xff] }
 0x294   :  { %1252 = vpow2.f32 %v199_v10  ;;  %v22_v10 = vld [vmem:[%s1513_s1 + $0x40] sm:$0xff] }
 0x29a   :  { %v1251_v11 = vpop.eup %1250 }
 0x29b   :  { %v201_v12 = vsel %vm44_vm2, %v1251_v11, 0.0 }
 0x29c   :  { %202 = vadd.xlane.f32.xlu1 %v201_v12  ;;  %v23_v12 = vld [vmem:[%s1513_s1 + $0x48] sm:$0xff] }
 0x29e   :  { %v1253_v13 = vpop.eup %1252 }
 0x29f   :  { %v204_v14 = vsel %vm44_vm2, %v1253_v13, 0.0 }
 0x2a0   :  { %205 = vadd.xlane.f32.xlu1 %v204_v14 }
 0x329   :  { %v203_v22 = vpop.xlane.xlu1 %202 }
 0x32a   :  { %1254 = vrcp.f32 %v203_v22 }
 0x32d   :  { %v206_v23 = vpop.xlane.xlu1 %205 }
 0x32e   :  { %1256 = vrcp.f32 %v206_v23 }
 0x334   :  { %v1255_v24 = vpop.eup %1254 }
 0x335   :  { %v208_v25 = vmul.f32 %v1255_v24, %v1251_v11  ;;  %v24_v11 = vpack.c.bf16 %v21_v9, %v20_v8  ;;  %v28_v24 = vld [vmem:[%s1513_s1 + $0x58] sm:$0xff] }
 0x337   :  { %v211_v28 = vmul.f32 %v208_v25, %v1314_v3  ;;  %v265_v3 = vld [vmem:[%s1514_s0 + $0x10] sm:$0x3]  ;;  %v29_v25 = vpack.c.bf16 %v28_v24, %v28_v24 }
 0x338   :  { %v1257_v26 = vpop.eup %1256  ;;  %267 = vst.msk [vmem:[#allocation2] sm:$0x3] %vm266_vm4, %v265_v3 }
 0x339   :  { %v210_v27 = vmul.f32 %v1257_v26, %v1253_v13  ;;  %v25_v13 = vpack.c.bf16 %v23_v12, %v22_v10  ;;  %v904_v26 = vsel %vm93_vm3, %v29_v25, 0 }
 0x33b   :  { %v212_v29 = vmul.f32 %v210_v27, %v1319_v6  ;;  %v269_v6 = vld [vmem:[%s1514_s0 + $0x12] sm:$0x3]  ;;  %v1035_v27 = vld [vmem:[%s1513_s1 + $0x64] ss:$0 sm:$0xff] }
 0x33c   :  { %270 = vst.msk [vmem:[#allocation2 + $0x10] sm:$0x3] %vm266_vm4, %v269_v6 }
 0x33d   :  { %v213_v30 = vpack.c.bf16 %v212_v29, %v211_v28 }
 0x33f   :  { %1104 = vmatmul.mubr.msk.bf16.vlgmr.msra.gmra.mrb[4].mxu0 %vm44_vm2, %v213_v30 }
 0x340   :  { %1206 = vmatpush3.bf16.msra.mxu0 %v1365_v17  ;;  %1126 = vmatprep.mubr.msk.f32.mxu0 %vm1285_vm1, %v1284_v0 }
 0x341   :  { %1207 = vmatprep.subr.bf16.mxu0 %v1286_v18 }
 0x343   :  { %v827_v19 = vld [vmem:[#allocation2 + $0x10] sm:$0xff] }
 0x344   :  { %1209 = vmatpush3.bf16.msra.mxu0 %v1377_v21  ;;  %v829_v22 = vpack.c.bf16 %v827_v19, %v827_v19 }
 0x345   :  { %1216 = vmatprep.subr.bf16.mxu0 %v1286_v18 }
 0x412   :  { %v258_v34 = vpop.f32.mrb[4].mxu0 }
 0x413   :  { %v259_v35 = vadd.f32 %v1027_v33, %v258_v34  ;;  %v1105_v36 = vpop.f32.mrb[5].mxu0 }
 0x414   :  { %v261_v37 = vpop.f32.mrb[6].mxu0 }
 0x415   :  { %v344_v38 = vadd.f32 %v340_v31, %v259_v35  ;;  %v1408_v39 = vadd.f32 %v1027_v33, %v261_v37  ;;  %v1106_v40 = vpop.f32.mrb[7].mxu0 }
 0x417   :  { %1258 = vtanh.f32 %v344_v38  ;;  %v1038_v38 = vld [vmem:[%s1513_s1 + $0x66] ss:$0 sm:$0xff] }
 0x421   :  { %v1259_v41 = vpop.eup %1258 }
 0x422   :  { %346 = vst.msk [vmem:[#allocation2 + $0x2] sm:$0x3] %vm266_vm4, %v1259_v41  ;;  %1127 = vmatmul.mubr.msk.f32.vlgmr.msra.gmra.mrb[8].mxu0 %vm93_vm3, %v1259_v41 }
 0x423   :  { %1218 = vmatpush3.bf16.msra.mxu0 %v1365_v17  ;;  %1148 = vmatprep.mubr.msk.f32.mxu0 %vm1285_vm1, %v1284_v0 }
 0x424   :  { %1219 = vmatprep.subr.bf16.mxu0 %v1286_v18 }
 0x427   :  { %1221 = vmatpush3.bf16.msra.mxu0 %v1377_v21 }
 0x428   :  { %1228 = vmatprep.subr.bf16.mxu0 %v1286_v18 }
 0x4f5   :  { %v416_v42 = vpop.f32.mrb[8].mxu0 }
 0x4f6   :  { %v421_v43 = vrot.slane %v416_v42, 6  ;;  %v1128_v44 = vpop.f32.mrb[9].mxu0 }
 0x4f8   :  { %v423_v45 = vadd.f32 %v421_v43, %v259_v35 }
 0x4fa   :  { %1260 = vtanh.f32 %v423_v45 }
 0x504   :  { %v1261_v46 = vpop.eup %1260 }
 0x505   :  { %426 = vst.msk [vmem:[#allocation2 + $0x2] sm:$0xc] %vm425_vm5, %v1261_v46  ;;  %v428_v47 = vrot.slane %v1261_v46, 2 }
 0x507   :  { %1138 = vmatmul.mubr.msk.f32.vlgmr.msra.gmra.mrb[6].mxu1 %vm93_vm3, %v428_v47 }
 0x508   :  { %1224 = vmatpush3.bf16.msra.mxu1 %v1365_v17  ;;  %1159 = vmatprep.mubr.msk.f32.mxu1 %vm1285_vm1, %v1284_v0 }
 0x509   :  { %1225 = vmatprep.subr.bf16.mxu1 %v1286_v18 }
 0x50c   :  { %1227 = vmatpush3.bf16.msra.mxu1 %v1377_v21 }
 0x50d   :  { %1234 = vmatprep.subr.bf16.mxu1 %v1286_v18 }
 0x5da   :  { %v497_v48 = vpop.f32.mrb[6].mxu1 }
 0x5db   :  { %v502_v49 = vrot.slane %v497_v48, 4  ;;  %v1139_v50 = vpop.f32.mrb[7].mxu1 }
 0x5dd   :  { %v504_v51 = vadd.f32 %v502_v49, %v259_v35 }
 0x5df   :  { %1262 = vtanh.f32 %v504_v51 }
 0x5e9   :  { %v1263_v52 = vpop.eup %1262 }
 0x5ea   :  { %507 = vst.msk [vmem:[#allocation2 + $0x2] sm:$0x30] %vm506_vm6, %v1263_v52  ;;  %v509_v53 = vrot.slane %v1263_v52, 4 }
 0x5ec   :  { %1149 = vmatmul.mubr.msk.f32.vlgmr.msra.gmra.mrb[10].mxu0 %vm93_vm3, %v509_v53 }
 0x5ed   :  { %1230 = vmatpush3.bf16.msra.mxu0 %v1365_v17  ;;  %1170 = vmatprep.mubr.msk.f32.mxu0 %vm1285_vm1, %v1284_v0 }
 0x5ee   :  { %1231 = vmatprep.subr.bf16.mxu0 %v1286_v18 }
 0x5f1   :  { %1233 = vmatpush3.bf16.msra.mxu0 %v1377_v21  ;;  %v825_v20 = vld [vmem:[#allocation2] sm:$0xff] }
 0x5f2   :  { %1184 = vmatprep.subr.bf16.mxu0 %v24_v11 }
 0x6bf   :  { %v578_v54 = vpop.f32.mrb[10].mxu0 }
 0x6c0   :  { %v583_v55 = vrot.slane %v578_v54, 2  ;;  %v1150_v56 = vpop.f32.mrb[11].mxu0 }
 0x6c2   :  { %v585_v57 = vadd.f32 %v583_v55, %v259_v35 }
 0x6c4   :  { %1264 = vtanh.f32 %v585_v57 }
 0x6ce   :  { %v1265_v58 = vpop.eup %1264 }
 0x6cf   :  { %588 = vst.msk [vmem:[#allocation2 + $0x2] sm:$0xc0] %vm587_vm7, %v1265_v58  ;;  %v590_v59 = vrot.slane %v1265_v58, 6 }
 0x6d1   :  { %1160 = vmatmul.mubr.msk.f32.vlgmr.msra.gmra.mrb[8].mxu1 %vm93_vm3, %v590_v59 }
 0x6d2   :  { %1236 = vmatpush3.bf16.msra.mxu1 %v1365_v17  ;;  %1181 = vmatprep.mubr.msk.f32.mxu1 %vm1285_vm1, %v1284_v0 }
 0x6d3   :  { %1237 = vmatprep.subr.bf16.mxu1 %v1286_v18 }
 0x6d6   :  { %1239 = vmatpush3.bf16.msra.mxu1 %v1377_v21 }
 0x6d7   :  { %1240 = vmatprep.subr.msk.bf16.mxu1 %vm93_vm3, %v29_v25 }
 0x7a4   :  { %v659_v60 = vpop.f32.mrb[8].mxu1 }
 0x7a5   :  { %v663_v61 = vadd.f32 %v659_v60, %v1408_v39  ;;  %v1161_v62 = vpop.f32.mrb[9].mxu1 }
 0x7a7   :  { %1266 = vtanh.f32 %v663_v61 }
 0x7b1   :  { %v1267_v63 = vpop.eup %1266 }
 0x7b2   :  { %665 = vst.msk [vmem:[#allocation2 + $0xa] sm:$0x3] %vm266_vm4, %v1267_v63  ;;  %1171 = vmatmul.mubr.msk.f32.vlgmr.msra.gmra.mrb[12].mxu0 %vm93_vm3, %v1267_v63  ;;  %v954_v63 = vlaneseq }
 0x7b3   :  { %1185 = vmatpush3.bf16.msra.mxu0 %v24_v11 }
 0x7b4   :  { %1186 = vmatprep.subr.bf16.mxu0 %v25_v13 }
 0x7b7   :  { %1187 = vmatpush3.bf16.msra.mxu0 %v25_v13 }
 0x885   :  { %v735_v1 = vpop.f32.mrb[12].mxu0 }
 0x886   :  { %v740_v2 = vrot.slane %v735_v1, 6  ;;  %v1172_v4 = vpop.f32.mrb[13].mxu0 }
 0x888   :  { %v742_v5 = vadd.f32 %v740_v2, %v1408_v39 }
 0x88a   :  { %1268 = vtanh.f32 %v742_v5 }
 0x894   :  { %v1269_v0 = vpop.eup %1268 }
 0x895   :  { %744 = vst.msk [vmem:[#allocation2 + $0xa] sm:$0xc] %vm425_vm5, %v1269_v0  ;;  %v746_v7 = vrot.slane %v1269_v0, 2  ;;  %v955_v0 = vand.u32 127, %v954_v63 }
 0x897   :  { %1182 = vmatmul.mubr.msk.f32.vlgmr.msra.gmra.mrb[10].mxu1 %vm93_vm3, %v746_v7  ;;  %vm956_vm9 = vcmp.ge.s32.totalorder %v955_v0, 4 }
 0x898   :  { %1193 = vmatpush3.bf16.xpose.msra.mxu1 %v904_v26 }
 0x96a   :  { %v815_v14 = vpop.f32.mrb[10].mxu1 }
 0x96b   :  { %v820_v15 = vrot.slane %v815_v14, 4  ;;  %v1183_v16 = vpop.f32.mrb[11].mxu1 }
 0x96d   :  { %v822_v17 = vadd.f32 %v820_v15, %v1408_v39 }
 0x96f   :  { %1270 = vtanh.f32 %v822_v17 }
 0x979   :  { %v1271_v18 = vpop.eup %1270 }
 0x97a   :  { %824 = vst.msk [vmem:[#allocation2 + $0xa] sm:$0x30] %vm506_vm6, %v1271_v18 }
 0x981   :  { %v826_v21 = vld [vmem:[#allocation2 + $0x8] sm:$0xff] }
 0x982   :  { %v828_v23 = vpack.c.bf16 %v826_v21, %v825_v20 }
 0x984   :  { %1188 = vmatprep.mubr.msk.bf16.mxu0 %vm93_vm3, %v828_v23 }
 0x985   :  { %1189 = vmatmul.mubr.msk.bf16.vlgmr.msra.gmra.mrb[16].mxu0 %vm93_vm3, %v829_v22 }
 0xa58   :  { %v1190_v28 = vpop.f32.mrb[16].mxu0 }
 0xa59   :  { %v883_v29 = vadd.f32 %v1190_v28, %v1035_v27  ;;  %v874_v30 = vpop.f32.mrb[17].mxu0 }
 0xa5a   :  { %v875_v3 = vadd.f32 %v1035_v27, %v874_v30  ;;  %v1191_v6 = vpop.f32.mrb[18].mxu0 }
 0xa5b   :  { %v877_v31 = vpop.f32.mrb[19].mxu0  ;;  %v890_v33 = vmax.f32 %v883_v29, 0.0 }
 0xa5c   :  { %v878_v32 = vadd.f32 %v1035_v27, %v877_v31  ;;  %v888_v34 = vmax.f32 %v875_v3, 0.0 }
 0xa5d   :  { %v892_v37 = vpack.c.bf16 %v890_v33, %v890_v33 }
 0xa5e   :  { %v889_v35 = vmax.f32 %v878_v32, 0.0 }
 0xa60   :  { %v891_v36 = vpack.c.bf16 %v889_v35, %v888_v34 }
 0xa62   :  { %1194 = vmatprep.mubr.msk.bf16.mxu1 %vm93_vm3, %v891_v36 }
 0xa63   :  { %1195 = vmatmul.mubr.msk.bf16.vlgmr.msra.gmra.mrb[12].mxu1 %vm93_vm3, %v892_v37 }
 0xb36   :  { %v1196_v39 = vpop.f32.mrb[12].mxu1 }
 0xb37   :  { %v1474_v40 = vadd.f32 %v1196_v39, %v1038_v38  ;;  %v940_v41 = vpop.f32.mrb[13].mxu1 }
 0xb38   :  { %v1476_v42 = vadd.f32 %v1038_v38, %v940_v41  ;;  %v1197_v43 = vpop.f32.mrb[14].mxu1 }
 0xb39   :  { %v968_v44 = vand.u32 2147483647, %v1474_v40  ;;  %v943_v45 = vpop.f32.mrb[15].mxu1  ;;  %v959_v14 = vmax.f32 %v1474_v40, 0.0  ;;  %vm962_vm11 = vcmp.ne.f32.partialorder %v1474_v40, %v1474_v40 }
 0xb3a   :  { %v966_v46 = vand.u32 2147483647, %v1476_v42  ;;  %v1480_v47 = vadd.f32 %v1038_v38, %v943_v45  ;;  %v957_v19 = vmax.f32 %v1476_v42, 0.0  ;;  %vm960_vm13 = vcmp.ne.f32.partialorder %v1476_v42, %v1476_v42 }
 0xb3b   :  { %v971_v48 = vsub.f32 0.0, %v968_v44 }
 0xb3c   :  { %v969_v49 = vsub.f32 0.0, %v966_v46  ;;  %v967_v50 = vand.u32 2147483647, %v1480_v47  ;;  %v958_v25 = vmax.f32 %v1480_v47, 0.0  ;;  %vm961_vm14 = vcmp.ne.f32.partialorder %v1480_v47, %v1480_v47 }
 0xb3d   :  { %v976_v51 = vmul.f32 1.442695, %v971_v48 }
 0xb3e   :  { %v972_v52 = vmul.f32 1.442695, %v969_v49  ;;  %v970_v53 = vsub.f32 0.0, %v967_v50 }
 0xb3f   :  { %1272 = vpow2.f32 %v976_v51 }
 0xb40   :  { %1274 = vpow2.f32 %v972_v52  ;;  %v974_v54 = vmul.f32 1.442695, %v970_v53 }
 0xb42   :  { %1276 = vpow2.f32 %v974_v54 }
 0xb49   :  { %v1273_v55 = vpop.eup %1272 }
 0xb4a   :  { %v1275_v56 = vpop.eup %1274  ;;  %v996_v57 = vadd.f32 1.0, %v1273_v55  ;;  %v999_v61 = vmul.f32 -0.5, %v1273_v55  ;;  %v1002_v4 = vand.u32 2147483647, %v1273_v55 }
 0xb4b   :  { %v978_v58 = vadd.f32 1.0, %v1275_v56  ;;  %v981_v62 = vmul.f32 -0.5, %v1275_v56  ;;  %v984_v7 = vand.u32 2147483647, %v1275_v56 }
 0xb4c   :  { %v1277_v59 = vpop.eup %1276  ;;  %1278 = vlog2.f32 %v996_v57  ;;  %v1000_v2 = vadd.f32 1.0, %v999_v61  ;;  %vm1003_vm8 = vcmp.lt.f32.partialorder %v1002_v4, 0.0004427343 }
 0xb4d   :  { %1280 = vlog2.f32 %v978_v58  ;;  %v987_v60 = vadd.f32 1.0, %v1277_v59  ;;  %v990_v1 = vmul.f32 -0.5, %v1277_v59  ;;  %v982_v5 = vadd.f32 1.0, %v981_v62 }
 0xb4e   :  { %v1001_v12 = vmul.f32 %v1273_v55, %v1000_v2  ;;  %v993_v13 = vand.u32 2147483647, %v1277_v59  ;;  %vm985_vm10 = vcmp.lt.f32.partialorder %v984_v7, 0.0004427343 }
 0xb4f   :  { %1282 = vlog2.f32 %v987_v60  ;;  %v991_v9 = vadd.f32 1.0, %v990_v1  ;;  %v983_v16 = vmul.f32 %v1275_v56, %v982_v5 }
 0xb50   :  { %vm994_vm12 = vcmp.lt.f32.partialorder %v993_v13, 0.0004427343 }
 0xb51   :  { %v992_v23 = vmul.f32 %v1277_v59, %v991_v9 }
 0xb56   :  { %v1279_v8 = vpop.eup %1278 }
 0xb57   :  { %v1281_v10 = vpop.eup %1280  ;;  %v998_v11 = vmul.f32 0.6931472, %v1279_v8 }
 0xb58   :  { %v980_v15 = vmul.f32 0.6931472, %v1281_v10 }
 0xb59   :  { %v1283_v17 = vpop.eup %1282  ;;  %v1004_v18 = vsel %vm1003_vm8, %v1001_v12, %v998_v11 }
 0xb5a   :  { %v1007_v20 = vadd.f32 %v1004_v18, %v959_v14  ;;  %v986_v21 = vsel %vm985_vm10, %v983_v16, %v980_v15  ;;  %v989_v22 = vmul.f32 0.6931472, %v1283_v17 }
 0xb5b   :  { %v1005_v24 = vadd.f32 %v986_v21, %v957_v19 }
 0xb5c   :  { %v1010_v26 = vsel %vm962_vm11, %v1474_v40, %v1007_v20  ;;  %v995_v27 = vsel %vm994_vm12, %v992_v23, %v989_v22 }
 0xb5d   :  { %v1013_v28 = vsel %vm956_vm9, %v1010_v26, %v1474_v40  ;;  %v1008_v29 = vsel %vm960_vm13, %v1476_v42, %v1005_v24  ;;  %v1006_v30 = vadd.f32 %v995_v27, %v958_v25 }
 0xb5e   :  { %1016 = vst.msk [vmem:[%s1515_s2 + $0x10] sm:$0xff] %vm44_vm2, %v1013_v28  ;;  %v1011_v3 = vsel %vm956_vm9, %v1008_v29, %v1476_v42 }
 0xb5f   :  { %1014 = vst.msk [vmem:[%s1515_s2] sm:$0xff] %vm44_vm2, %v1011_v3  ;;  %v1009_v6 = vsel %vm961_vm14, %v1480_v47, %v1006_v30 }
 0xb60   :  { %v1012_v31 = vsel %vm956_vm9, %v1009_v6, %v1480_v47 }
 0xb61   :  { %1015 = vst.msk [vmem:[%s1515_s2 + $0x8] sm:$0xff] %vm44_vm2, %v1012_v31 }

</bundles_post_ra>
